<compile_context>
chip_gen: v7x
topology: tpu7x:2x2x1
jax: 0.10.0
libtpu: 0.0.40
codegen_flags: <defaults>
</compile_context>

<pallas_src>
import jax
import jax.numpy as jnp
from jax.experimental import pallas as pl
from jax.experimental.pallas import tpu as pltpu

HP = 128          # padded hidden width (lane-dense for the two hidden matmuls)
MAX_B_TILE = 512  # cap on rows per grid step


def _round_up(x, m):
    return ((x + m - 1) // m) * m


def _make_dnn_kernel(d_feat_p, d_out):
    """Build the kernel with static slab-row offsets baked in.

    Slab layout (rows, all offsets multiples of 8 so slices lower as views —
    verified cheap via pl.lower_as_mlir; no VMEM copies of the w2/w3 tiles):
        [0        : d_feat_p)  w1  (d_feat_p, HP)   fc1 weights for packed features
        [d_feat_p : +HP)       w2  (HP, HP)
        [.. +HP   : +HP)       w3  (HP, 128)  (only first d_out columns real)
        last 8 rows            biases: row0=b1, row1=b2, row2=b3
    """
    r_w2 = d_feat_p
    r_w3 = r_w2 + HP
    r_b = r_w3 + HP

    def kernel(x_ref, w_ref, o_ref):
        w1 = w_ref[0:r_w2, :]          # (d_feat_p, HP)
        w2 = w_ref[r_w2:r_w3, :]       # (HP, HP)
        w3 = w_ref[r_w3:r_b, :]        # (HP, 128)
        bb = w_ref[r_b:r_b + 8, :]     # (8, 128): rows 0,1,2 hold b1, b2, b3

        h = jnp.dot(x_ref[...], w1, preferred_element_type=jnp.float32) + bb[0:1, :]
        h = jnp.maximum(h, 0.0)
        h = jnp.dot(h, w2, preferred_element_type=jnp.float32) + bb[1:2, :]
        h = jnp.maximum(h, 0.0)
        y = jnp.dot(h, w3, preferred_element_type=jnp.float32) + bb[2:3, :]
        # Store only the real d_out lanes (masked vst; 14x less HBM writeback than
        # a 128-lane-padded output, and no post-kernel lane slice).
        o_ref[...] = y[:, :d_out]

    return kernel


def prepare_params(params, d_hn, d_wt):
    """One-time parameter layout prep (call ONCE, off the hot path).

    Takes PyTorch nn.Linear layout (W: (out, in), b: (out,)) and packs all three
    layers into a single zero-padded, transposed f32 slab of shape (R, 128).
    Zero padding keeps the padded matmuls bit-identical to the unpadded net.
    """
    w1, b1, w2, b2, w3, b3 = [jnp.asarray(p, jnp.float32) for p in params]
    h1, h2, d_out = w1.shape[0], w2.shape[0], w3.shape[0]
    d_in = d_hn + d_wt
    assert h1 <= HP and h2 <= HP and d_out <= 128
    assert w1.shape[1] == d_in

    d_feat_p = _round_up(d_in, 8)                                 # e.g. 35 -> 40

    w1p = jnp.zeros((d_feat_p, HP), jnp.float32).at[:d_in, :h1].set(w1.T)
    w2p = jnp.zeros((HP, HP), jnp.float32).at[:h1, :h2].set(w2.T)
    w3p = jnp.zeros((HP, 128), jnp.float32).at[:h2, :d_out].set(w3.T)
    bp = (jnp.zeros((8, 128), jnp.float32)
          .at[0, :h1].set(b1)
          .at[1, :h2].set(b2)
          .at[2, :d_out].set(b3))

    slab = jnp.concatenate([w1p, w2p, w3p, bp], axis=0)           # (R, 128)
    meta = dict(d_hn=d_hn, d_wt=d_wt, d_feat_p=d_feat_p, d_out=d_out)
    return slab, meta


def pack_features(hn, wt, meta):
    """Pack hn‖wt into one (B, d_feat_p) array (zero-padded to a multiple of 8).

    This is the only remaining wrapper-side copy; in production it should be fused
    into the upstream LSTM producer so it never becomes a standalone HBM pass.
    # TODO(synk): emit packed/padded features directly from the LSTM kernel.
    """
    B = hn.shape[0]
    hn_flat = hn.reshape(B, -1).astype(jnp.float32)
    wt_flat = wt.reshape(B, -1).astype(jnp.float32)
    assert hn_flat.shape[1] == meta["d_hn"] and wt_flat.shape[1] == meta["d_wt"]
    pad = meta["d_feat_p"] - meta["d_hn"] - meta["d_wt"]
    parts = [hn_flat, wt_flat]
    if pad:
        parts.append(jnp.zeros((B, pad), jnp.float32))
    return jnp.concatenate(parts, axis=1)


def _pick_b_tile(B):
    """>= 2 grid steps whenever B > 8 (v7x dual-TC), multiple of 8, capped at 512."""
    return min(MAX_B_TILE, max(8, _round_up((B + 1) // 2, 8)))


def dnn_forward_batched(features, prepped):
    """Batched forward on packed features (B, d_feat_p) -> (B, 3**A)."""
    slab, meta = prepped
    B, F = features.shape
    assert F == meta["d_feat_p"]
    d_out = meta["d_out"]
    R = slab.shape[0]

    b_tile = _pick_b_tile(B)
    grid = pl.cdiv(B, b_tile)   # ragged last tile: OOB rows read garbage, write masked
    kernel = _make_dnn_kernel(F, d_out)

    return pl.pallas_call(
        kernel,
        out_shape=jax.ShapeDtypeStruct((B, d_out), jnp.float32),
        grid=(grid,),
        in_specs=[
            pl.BlockSpec((b_tile, F), lambda i: (i, 0)),
            # Constant index_map: the packed weight slab is DMA'd once and stays
            # VMEM-resident across every batch tile.
            pl.BlockSpec((R, 128), lambda i: (0, 0)),
        ],
        out_specs=pl.BlockSpec((b_tile, d_out), lambda i: (i, 0)),
        compiler_params=pltpu.CompilerParams(
            dimension_semantics=("parallel",),   # shards the batch grid across v7x's 2 TCs
        ),
    )(features.astype(jnp.float32), slab)


def dnn_forward_batched_from_hn_wt(hn, wt, prepped):
    """Convenience wrapper: hn (B, A, L) or (B, A*L), wt (B, A+1) -> (B, 3**A)."""
    _, meta = prepped
    return dnn_forward_batched(pack_features(hn, wt, meta), prepped)


def dnn_forward(hn, wt, params):
    """Single-sample forward matching the torch signature.

    Deliberately NOT a pallas_call: at B=1 a standalone kernel launch for 9 outputs
    is pure overhead on every generation; XLA fusion (or fusing this head into the
    upstream LSTM Pallas kernel) wins outright.
    """
    w1, b1, w2, b2, w3, b3 = [jnp.asarray(p, jnp.float32) for p in params]
    x = jnp.concatenate([hn.reshape(-1), wt.reshape(-1)], axis=0)
    x = jnp.maximum(x @ w1.T + b1, 0.0)
    x = jnp.maximum(x @ w2.T + b2, 0.0)
    return x @ w3.T + b3


def init_params(key, d_in, h1, h2, d_out):
    """Deterministic synthetic params, PyTorch Linear layout: W (out, in), b (out,)."""
    ks = jax.random.split(key, 6)
    scale = 0.1
    w1 = scale * jax.random.normal(ks[0], (h1, d_in), jnp.float32)
    b1 = scale * jax.random.normal(ks[1], (h1,), jnp.float32)
    w2 = scale * jax.random.normal(ks[2], (h2, h1), jnp.float32)
    b2 = scale * jax.random.normal(ks[3], (h2,), jnp.float32)
    w3 = scale * jax.random.normal(ks[4], (d_out, h2), jnp.float32)
    b3 = scale * jax.random.normal(ks[5], (d_out,), jnp.float32)
    return (w1, b1, w2, b2, w3, b3)


def _reference(hn, wt, params):
    """Pure-JAX reference mirroring the PyTorch forward exactly (one sample)."""
    w1, b1, w2, b2, w3, b3 = params
    x = jnp.concatenate([hn.reshape(-1), wt.reshape(-1)], axis=0)
    x = jnp.maximum(x @ w1.T + b1, 0.0)
    x = jnp.maximum(x @ w2.T + b2, 0.0)
    return x @ w3.T + b3


if __name__ == "__main__":
    # Config consistent with the module:
    #   asset_num = 2, LSTM_output_size = 16
    #   fc1 in = 16*2 + 2 + 1 = 35, DNN_hidden_size_1 = 32, DNN_hidden_size_2 = 32
    #   fc3 out = 3**2 = 9
    asset_num = 2
    lstm_output_size = 16
    h1 = h2 = 32
    d_hn = asset_num * lstm_output_size          # 32
    d_wt = asset_num + 1                         # 3
    d_in = d_hn + d_wt                           # 35
    d_out = 3 ** asset_num                       # 9

    key = jax.random.PRNGKey(0)
    k_hn, k_wt, k_params, k_hnb, k_wtb, k_hns, k_wts = jax.random.split(key, 7)

    params = init_params(k_params, d_in, h1, h2, d_out)
    prepped = prepare_params(params, d_hn, d_wt)   # one-time layout prep (off hot path)

    # --- single-sample path (mirrors the torch forward signature; plain JAX by design) ---
    hn = jax.random.normal(k_hn, (asset_num, lstm_output_size), jnp.float32)
    wt = jax.random.normal(k_wt, (asset_num + 1,), jnp.float32)
    out1 = jax.block_until_ready(dnn_forward(hn, wt, params))
    ref1 = _reference(hn, wt, params)
    assert out1.shape == (d_out,)
    assert jnp.allclose(out1, ref1, atol=1e-5, rtol=1e-5), "single-sample mismatch vs reference"

    # --- batched Pallas path: B not a multiple of the tile, exercises the ragged last block ---
    B = 200   # b_tile = 104, grid = 2 (both v7x TCs busy; last block has 8 masked rows)
    hn_b = jax.random.normal(k_hnb, (B, asset_num, lstm_output_size), jnp.float32)
    wt_b = jax.random.normal(k_wtb, (B, asset_num + 1), jnp.float32)
    out_b = jax.block_until_ready(dnn_forward_batched_from_hn_wt(hn_b, wt_b, prepped))
    ref_b = jax.vmap(lambda h, w: _reference(h, w, params))(hn_b, wt_b)
    assert out_b.shape == (B, d_out)
    assert jnp.allclose(out_b, ref_b, atol=1e-4, rtol=1e-4), "batched mismatch vs reference"

    # --- tiny batch (single 8-row tile, 5 masked rows) ---
    Bs = 3
    hn_s = jax.random.normal(k_hns, (Bs, asset_num, lstm_output_size), jnp.float32)
    wt_s = jax.random.normal(k_wts, (Bs, asset_num + 1), jnp.float32)
    out_s = jax.block_until_ready(dnn_forward_batched_from_hn_wt(hn_s, wt_s, prepped))
    ref_s = jax.vmap(lambda h, w: _reference(h, w, params))(hn_s, wt_s)
    assert out_s.shape == (Bs, d_out)
    assert jnp.allclose(out_s, ref_s, atol=1e-4, rtol=1e-4), "small-batch mismatch vs reference"

    print("KERNEL_OK")
</pallas_src>

<mosaic_0001>
module attributes {stable_mosaic.version = 11 : i64} {
  func.func @kernel(%arg0: i32, %arg1: memref<104x40xf32, #tpu.memory_space<vmem>>, %arg2: memref<304x128xf32, #tpu.memory_space<vmem>>, %arg3: memref<104x9xf32, #tpu.memory_space<vmem>>) attributes {dimension_semantics = [#tpu.dimension_semantics<parallel>], iteration_bounds = array<i64: 2>, scalar_prefetch = 0 : i64, scratch_operands = 0 : i64, tpu.core_type = #tpu.core_type<tc>, window_params = [{transform_indices = @transform_0, window_bounds = array<i64: 104, 40>}, {pipeline_mode = #tpu.pipeline_mode<synchronous>, transform_indices = @transform_1, window_bounds = array<i64: 304, 128>}, {transform_indices = @transform_2, window_bounds = array<i64: 104, 9>}]} {
    %c0 = arith.constant 0 : index
    %c0_0 = arith.constant 0 : index
    %0 = vector.load %arg2[%c0, %c0_0] : memref<304x128xf32, #tpu.memory_space<vmem>>, vector<40x128xf32>
    %c40 = arith.constant 40 : index
    %c0_1 = arith.constant 0 : index
    %1 = vector.load %arg2[%c40, %c0_1] : memref<304x128xf32, #tpu.memory_space<vmem>>, vector<128x128xf32>
    %c168 = arith.constant 168 : index
    %c0_2 = arith.constant 0 : index
    %2 = vector.load %arg2[%c168, %c0_2] : memref<304x128xf32, #tpu.memory_space<vmem>>, vector<128x128xf32>
    %c296 = arith.constant 296 : index
    %c0_3 = arith.constant 0 : index
    %3 = vector.load %arg2[%c296, %c0_3] : memref<304x128xf32, #tpu.memory_space<vmem>>, vector<8x128xf32>
    %c0_4 = arith.constant 0 : index
    %c0_5 = arith.constant 0 : index
    %4 = vector.load %arg1[%c0_4, %c0_5] : memref<104x40xf32, #tpu.memory_space<vmem>>, vector<104x40xf32>
    %cst = arith.constant dense<0.000000e+00> : vector<104x128xf32>
    %5 = tpu.matmul %4, %0, %cst {dimension_numbers = #tpu.dot_dimension_numbers<[1], [0], [0], [1], [0, 0, 1, 1], [], []>} : vector<104x40xf32>, vector<40x128xf32>, vector<104x128xf32> -> vector<104x128xf32>
    %6 = vector.extract_strided_slice %3 {offsets = [0, 0], sizes = [1, 128], strides = [1, 1]} : vector<8x128xf32> to vector<1x128xf32>
    %7 = vector.broadcast %6 : vector<1x128xf32> to vector<104x128xf32>
    %8 = arith.addf %5, %7 : vector<104x128xf32>
    %cst_6 = arith.constant 0.000000e+00 : f32
    %9 = vector.broadcast %cst_6 : f32 to vector<104x128xf32>
    %10 = arith.maximumf %8, %9 : vector<104x128xf32>
    %cst_7 = arith.constant dense<0.000000e+00> : vector<104x128xf32>
    %11 = tpu.matmul %10, %1, %cst_7 {dimension_numbers = #tpu.dot_dimension_numbers<[1], [0], [0], [1], [0, 0, 1, 1], [], []>} : vector<104x128xf32>, vector<128x128xf32>, vector<104x128xf32> -> vector<104x128xf32>
    %12 = vector.extract_strided_slice %3 {offsets = [1, 0], sizes = [1, 128], strides = [1, 1]} : vector<8x128xf32> to vector<1x128xf32>
    %13 = vector.broadcast %12 : vector<1x128xf32> to vector<104x128xf32>
    %14 = arith.addf %11, %13 : vector<104x128xf32>
    %cst_8 = arith.constant 0.000000e+00 : f32
    %15 = vector.broadcast %cst_8 : f32 to vector<104x128xf32>
    %16 = arith.maximumf %14, %15 : vector<104x128xf32>
    %cst_9 = arith.constant dense<0.000000e+00> : vector<104x128xf32>
    %17 = tpu.matmul %16, %2, %cst_9 {dimension_numbers = #tpu.dot_dimension_numbers<[1], [0], [0], [1], [0, 0, 1, 1], [], []>} : vector<104x128xf32>, vector<128x128xf32>, vector<104x128xf32> -> vector<104x128xf32>
    %18 = vector.extract_strided_slice %3 {offsets = [2, 0], sizes = [1, 128], strides = [1, 1]} : vector<8x128xf32> to vector<1x128xf32>
    %19 = vector.broadcast %18 : vector<1x128xf32> to vector<104x128xf32>
    %20 = arith.addf %17, %19 : vector<104x128xf32>
    %21 = vector.extract_strided_slice %20 {offsets = [0, 0], sizes = [104, 9], strides = [1, 1]} : vector<104x128xf32> to vector<104x9xf32>
    %c0_10 = arith.constant 0 : index
    %c0_11 = arith.constant 0 : index
    %22 = vector.load %arg3[%c0_10, %c0_11] : memref<104x9xf32, #tpu.memory_space<vmem>>, vector<104x9xf32>
    tpu.vector_store %arg3[%c0_10, %c0_11], %21 {strides = array<i32>} : memref<104x9xf32, #tpu.memory_space<vmem>>, vector<104x9xf32>,
    return
  }
  func.func @transform_0(%arg0: i32) -> (i32, i32) {
    %c0_i32 = arith.constant 0 : i32
    %c0_i32_0 = arith.constant 0 : i32
    return %arg0, %c0_i32 : i32, i32
  }
  func.func @transform_1(%arg0: i32) -> (i32, i32) {
    %c0_i32 = arith.constant 0 : i32
    %c0_i32_0 = arith.constant 0 : i32
    %c0_i32_1 = arith.constant 0 : i32
    return %c0_i32, %c0_i32_0 : i32, i32
  }
  func.func @transform_2(%arg0: i32) -> (i32, i32) {
    %c0_i32 = arith.constant 0 : i32
    %c0_i32_0 = arith.constant 0 : i32
    return %arg0, %c0_i32 : i32, i32
  }
}

</mosaic_0001>

<bundles_post_ra>
// kernel: tpu_custom_call.1
= control target key start
LH: loop header
LB: loop body
LE: loop exit
PB: predicated region body
PF: predicated region fallthrough
CT: control target
= control target key end

     0   :  { %7 = vsyncpa [#allocation3], 0  ;;  %s1601_s9 = smov 0   ;;  %s1603_s10 = smov 0   ;;  %s1959_s0 = inlined_call_operand.vmem [shape: f32[200,40], index: 0, kind: input, shape index: {}]   ;;  %s1960_s1 = inlined_call_operand.hbm [shape: f32[304,128], index: 1, kind: input, shape index: {}]   ;;  %s1961_s2 = inlined_call_operand.vmem [shape: f32[200,9], index: 2, kind: output, shape index: {}]  }
   0x1   :  { %s1605_s11 = smov 0  }
   0x2 LB: > { %s1614_s12 = sadd.s32 4294967295, %s1546_s11   ;;  %s1616_s13 = sadd.s32 1, %s1546_s11   ;;  %s1546_s11 = sphi %s1605_s11, %s1976_s11   ;;  %s1542_s10 = sphi %s1603_s10, %s1975_s10   ;;  %s1538_s9 = sphi %s1601_s9, %s1974_s9  }
   0x3   : > { %s64_s14 = ssub.s32 %s1546_s11, %s1616_s13  ;;  %s67_s15 = sadd.s32 1, %s1542_s10 }
   0x4   : > { %p65_p0 = scmp.eq.s32.totalorder %s64_s14, 0  ;;  %p77_p1 = scmp.ne.s32.totalorder %s1542_s10, %s1538_s9 }
   0x5   : > { %p78_p2 = scmp.eq.s32.totalorder %s1614_s12, 1  ;;  %p991_p3 = scmp.ge.s32.totalorder %s1546_s11, 1 }
   0x6   : > { %s1624_s16 = scalar_select %p65_p0, %s1542_s10, %s67_s15  }
   0x7   : > { %p1626_p4 = por %p78_p2, %p77_p1  ;;  %p91_p5 = scmp.lt.s32.totalorder %s1546_s11, 3 }
   0x8   : > { %p1962_p6 = scmp.eq.s32.totalorder %s1614_s12, 0  ;;  %s1580_s19 = smov [#allocation2]  }
   0x9   : > { %s1964_s17 = scalar_select %p1626_p4, 1, 0 }
   0xa   : > { %p1631_p7 = pnand %p991_p3, %p91_p5  ;;  %s103_s20 = sshll.u32 %s1580_s19, 4  ;;  %s104_s20 = int_to_ptr.vmem [resolvable:$true] %s103_s20 }
   0xb   : > { %s1460_s24 = scalar_lea.hbm %s1960_s1, 4864 }
   0xc   : > { %s1965_s18 = scalar_select %p1631_p7, 1, 0 }
   0xd   : > { %p1355_p8 = pneg %p1631_p7  ;;  %p1461_p10 = scmp.ne.s32.totalorder %s1960_s1, %s1460_s24 }
   0xe   : > { %p1467_p0 = scmp.lt.u32.totalorder %s1460_s24, %s1960_s1 }
   0xf   : > { %p1639_p9 = pnand %p1962_p6, %p1355_p8 }
  0x11   : > { %p1462_p11 = pneg %p1639_p9 }
  0x13   : > { %p1463_p12 = pnand %p1462_p11, %p1461_p10 }
  0x15   : > { %p1464_p13 = pneg %p1463_p12 }
  0x17   : > { %p1469_p1 = pnand %p1467_p0, %p1464_p13 }
  0x19   : > { %1472 = shalt.err (!%p1469_p1)
}
  0x1a   : > { %s1473_s29 = scalar_lea.vmem %s104_s20, 4864  ;;  %p1481_p8 = scmp.lt.s32.totalorder %s104_s20, %s104_s20 }
  0x1b   : > { %p1474_p2 = scmp.ne.s32.totalorder %s104_s20, %s1473_s29  ;;  %p1482_p6 = scmp.lt.s32.totalorder %s1473_s29, %s1473_s29 }
  0x1d   : > { %p1476_p3 = pnand %p1474_p2, %p1462_p11  ;;  %p1483_p4 = por %p1482_p6, %p1481_p8 }
  0x1f   : > { %p1477_p5 = pneg %p1476_p3 }
  0x21   : > { %p1484_p7 = pnand %p1483_p4, %p1477_p5 }
  0x23   : > { %1487 = shalt.err (!%p1484_p7)
}
  0x24   : > { %s1581_s30 = smov 128   ;;  %s1582_s3 = smov 8  }
  0x25   : > { %1358 = dma.hbm_to_vmem [thread:$0]  (!%p1639_p9), %s1960_s1, 4864, %s104_s20, [#allocation3], %s1581_s30, %s1581_s30, %s1582_s3  }
  0x26   : > { %p1967_p10 = scmp.ne.s32.totalorder %s1965_s18, 0 }
  0x27   : > { %p1968_p12 = scmp.eq.s32.totalorder (!%p1967_p10), %s1614_s12, 0 }
  0x28   : > { %136 = sbr.rel (%p1967_p10) target bundleno = 816 (0x330), region = 28 }
  0x2f   : > { %1533 = dma.done.wait (%p1968_p12), [#allocation3], 4864   ;;  %p1969_p11 = pmov %p1968_p12 }
  0x30   : > { %s1666_s6 = smul.u32 13, %s1614_s12  ;;  %v1583_v0 = vmov 0.0|0.0   ;;  %vm1584_vm0 = vmmov 0   ;;  %v1585_v1 = vmov 0.0   ;;  %v180_v2 = vld [vmem:[#allocation2] sm:$0xff]  ;;  %v181_v3 = vld [vmem:[#allocation2 + $0x8] sm:$0xff] }
  0x31   : > { %1535 = vsyncadd (%p1969_p11), [#allocation3], 4294962432  ;;  %1290 = vmatprep.subr.bf16.mxu0 %v1583_v0  ;;  %1109 = vmatprep.mubr.msk.f32.mxu0 %vm1584_vm0, %v1585_v1  ;;  %v182_v4 = vld [vmem:[#allocation2 + $0x10] sm:$0xff]  ;;  %v1291_v5 = vpack.c.bf16 %v181_v3, %v180_v2  ;;  %v183_v6 = vld [vmem:[#allocation2 + $0x18] sm:$0xff]  ;;  %vm235_vm1 = vcmask 326656   ;;  %s158_s18 = sand.u32 1, %s1538_s9  }
  0x32   : > { %p166_p4 = scmp.lt.s32.totalorder %s1666_s6, 24  ;;  %1344 = vmatprep.subr.bf16.mxu1 %v1583_v0  ;;  %1133 = vmatprep.mubr.msk.f32.mxu1 %vm1584_vm0, %v1585_v1  ;;  %v1294_v7 = vpack.c.bf16 %v183_v6, %v182_v4  ;;  %v184_v8 = vld [vmem:[#allocation2 + $0x20] sm:$0xff]  ;;  %v185_v9 = vld [vmem:[#allocation2 + $0x28] sm:$0xff]  ;;  %v186_v10 = vld [vmem:[#allocation2 + $0x30] sm:$0xff]  ;;  %s1350_s19 = smul.u32 104, %s158_s18  ;;  %vm699_vm2 = vcmask 72704  }
  0x33   : > { %1292 = vmatpush3.bf16.msra.mxu0 %v1291_v5  ;;  %1347 = vmatpush3.bf16.msra.mxu1 %v1291_v5  ;;  %v1297_v13 = vpack.c.bf16 %v186_v10, %v185_v9  ;;  %v187_v14 = vld [vmem:[#allocation2 + $0x38] sm:$0xff]  ;;  %v188_v15 = vld [vmem:[#allocation2 + $0x40] sm:$0xff]  ;;  %v189_v19 = vld [vmem:[#allocation2 + $0x48] sm:$0xff]  ;;  %v231_v5 = vlaneseq  ;;  %p1970_p6 = scmp.ne.s32.totalorder %s1964_s17, 0 }
  0x34   : > { %s167_s7 = scalar_select %p166_p4, %s1666_s6, 24  ;;  %1293 = vmatprep.subr.bf16.mxu0 %v1583_v0  ;;  %1345 = vmatprep.subr.bf16.mxu1 %v1583_v0  ;;  %v1300_v18 = vpack.c.bf16 %v188_v15, %v187_v14  ;;  %v190_v20 = vld [vmem:[#allocation2 + $0x50] sm:$0xff]  ;;  %v191_v24 = vld [vmem:[#allocation2 + $0x58] sm:$0xff]  ;;  %v192_v25 = vld [vmem:[#allocation2 + $0x60] sm:$0xff] }
  0x35   : > { %v1303_v23 = vpack.c.bf16 %v190_v20, %v189_v19  ;;  %v1306_v28 = vpack.c.bf16 %v192_v25, %v191_v24  ;;  %v193_v29 = vld [vmem:[#allocation2 + $0x68] sm:$0xff]  ;;  %v194_v30 = vld [vmem:[#allocation2 + $0x70] sm:$0xff]  ;;  %v195_v34 = vld [vmem:[#allocation2 + $0x78] sm:$0xff]  ;;  %v1753_v6 = vshrl.u32 %v231_v5, 7  ;;  %s1842_s20 = scalar_lea.vmem [#allocation4], %s1350_s19   ;;  %s721_s9 = ssub.s32 (%p1970_p6), 25, %s1666_s6 }
  0x36   : > { %s996_s8 = sshll.u32 %s167_s7, 3  ;;  %v1309_v33 = vpack.c.bf16 %v194_v30, %v193_v29  ;;  %v196_v35 = vld [vmem:[#allocation2 + $0x80] sm:$0xff]  ;;  %v197_v38 = vld [vmem:[#allocation2 + $0x88] sm:$0xff]  ;;  %v198_v39 = vld [vmem:[#allocation2 + $0x90] sm:$0xff]  ;;  %s1022_s21 = smul.u32 (%p1970_p6), 104, %s1614_s12 }
  0x37   : > { %s1681_s15 = scalar_lea.vmem %s1959_s0, %s996_s8  ;;  %1295 = vmatpush3.bf16.msra.mxu0 %v1294_v7  ;;  %1348 = vmatpush3.bf16.msra.mxu1 %v1294_v7  ;;  %v1312_v37 = vpack.c.bf16 %v196_v35, %v195_v34  ;;  %v1315_v41 = vpack.c.bf16 %v198_v39, %v197_v38  ;;  %v199_v43 = vld [vmem:[#allocation2 + $0x98] sm:$0xff]  ;;  %v200_v44 = vld [vmem:[#allocation2 + $0xa0] sm:$0xff]  ;;  %v201_v46 = vld [vmem:[#allocation2 + $0xa8] sm:$0xff]  ;;  %v233_v7 = vsub.s32 0, %v1753_v6  ;;  %p722_p7 = scmp.lt.s32.totalorder (%p1970_p6), %s721_s9, 13 }
  0x38   : > { %1107 = vmatprep.subr.mxu0 %v1585_v1  ;;  %1346 = vmatprep.subr.mxu1 %v1585_v1  ;;  %v218_v11 = vld [vmem:[%s1681_s15] sm:$0xff]  ;;  %v219_v16 = vld [vmem:[%s1681_s15 + $0x8] sm:$0xff]  ;;  %v220_v21 = vld [vmem:[%s1681_s15 + $0x10] sm:$0xff]  ;;  %v1318_v45 = vpack.c.bf16 %v200_v44, %v199_v43  ;;  %s1877_s24 = scalar_lea.vmem (%p1970_p6), %s1961_s2, %s1022_s21  }
  0x39   : > { %v226_v12 = vld [vmem:[%s1681_s15 + $0x40] sm:$0xff]  ;;  %v227_v17 = vld [vmem:[%s1681_s15 + $0x48] sm:$0xff]  ;;  %v228_v22 = vld [vmem:[%s1681_s15 + $0x50] sm:$0xff] }
  0x3a   : > { %v221_v26 = vld [vmem:[%s1681_s15 + $0x18] sm:$0xff]  ;;  %v222_v31 = vld [vmem:[%s1681_s15 + $0x20] sm:$0xff]  ;;  %v223_v36 = vld [vmem:[%s1681_s15 + $0x28] sm:$0xff] }
  0x3b   : > { %1108 = vmatpush3.msra.mxu0 %v184_v8  ;;  %1349 = vmatpush3.msra.mxu1 %v184_v8  ;;  %v229_v27 = vld [vmem:[%s1681_s15 + $0x58] sm:$0xff]  ;;  %v230_v32 = vld [vmem:[%s1681_s15 + $0x60] sm:$0xff]  ;;  %v224_v40 = vld [vmem:[%s1681_s15 + $0x30] sm:$0xff] }
  0x3c   : > { %1110 = vmatmul.mubr.msk.f32.vlgmr.msra.gmra.mrb[0].mxu0 %vm235_vm1, %v218_v11  ;;  %1134 = vmatmul.mubr.msk.f32.vlgmr.msra.gmra.mrb[0].mxu1 %vm235_vm1, %v226_v12  ;;  %v225_v42 = vld [vmem:[%s1681_s15 + $0x38] sm:$0xff]  ;;  %v202_v47 = vld [vmem:[#allocation2 + $0xb0] sm:$0xff]  ;;  %v204_v50 = vld [vmem:[#allocation2 + $0xc0] sm:$0xff] }
  0x3d   : > { %1112 = vmatprep.mubr.msk.f32.mxu0 %vm1584_vm0, %v1585_v1  ;;  %1136 = vmatprep.mubr.msk.f32.mxu1 %vm1584_vm0, %v1585_v1  ;;  %v203_v48 = vld [vmem:[#allocation2 + $0xb8] sm:$0xff]  ;;  %v1321_v49 = vpack.c.bf16 %v202_v47, %v201_v46  ;;  %v205_v52 = vld [vmem:[#allocation2 + $0xc8] sm:$0xff]  ;;  %v206_v53 = vld [vmem:[#allocation2 + $0xd0] sm:$0xff] }
  0x3e   : > { %1296 = vmatprep.subr.bf16.mxu1 %v1583_v0  ;;  %1320 = vmatprep.subr.bf16.mxu0 %v1583_v0  ;;  %v1324_v51 = vpack.c.bf16 %v204_v50, %v203_v48  ;;  %v1327_v54 = vpack.c.bf16 %v206_v53, %v205_v52  ;;  %v207_v55 = vld [vmem:[#allocation2 + $0xd8] sm:$0xff]  ;;  %v208_v56 = vld [vmem:[#allocation2 + $0xe0] sm:$0xff]  ;;  %v209_v58 = vld [vmem:[#allocation2 + $0xe8] sm:$0xff] }
  0x3f   : > { %1298 = vmatpush3.bf16.msra.mxu1 %v1297_v13  ;;  %1322 = vmatpush3.bf16.msra.mxu0 %v1321_v49  ;;  %v1330_v57 = vpack.c.bf16 %v208_v56, %v207_v55  ;;  %v210_v59 = vld [vmem:[#allocation2 + $0xf0] sm:$0xff]  ;;  %v211_v61 = vld [vmem:[#allocation2 + $0xf8] sm:$0xff]  ;;  %v212_v62 = vld [vmem:[#allocation2 + $0x100] sm:$0xff] }
  0x40   : > { %1113 = vmatmul.mubr.msk.f32.gmra.mrb[2].mxu0 %vm235_vm1, %v219_v16  ;;  %1137 = vmatmul.mubr.msk.f32.gmra.mrb[2].mxu1 %vm235_vm1, %v227_v17  ;;  %v1333_v60 = vpack.c.bf16 %v210_v59, %v209_v58  ;;  %v1336_v63 = vpack.c.bf16 %v212_v62, %v211_v61  ;;  %v213_v2 = vld [vmem:[#allocation2 + $0x108] sm:$0xff]  ;;  %v214_v3 = vld [vmem:[#allocation2 + $0x110] sm:$0xff]  ;;  %v215_v61 = vld [vmem:[#allocation2 + $0x118] sm:$0xff] }
  0x41   : > { %1115 = vmatprep.mubr.msk.f32.mxu0 %vm1584_vm0, %v1585_v1  ;;  %1139 = vmatprep.mubr.msk.f32.mxu1 %vm1584_vm0, %v1585_v1  ;;  %v1339_v4 = vpack.c.bf16 %v214_v3, %v213_v2  ;;  %v1756_v8 = vld [vmem:[#allocation2 + $0x128] sm:$0xff]  ;;  %v216_v62 = vld [vmem:[#allocation2 + $0x120] sm:$0xff]  ;;  %v420_v2 = vsub.s32 1, %v1753_v6 }
  0x42   : > { %1299 = vmatprep.subr.bf16.mxu1 %v1583_v0  ;;  %1323 = vmatprep.subr.bf16.mxu0 %v1583_v0  ;;  %v1759_v9 = vrot.slane %v1756_v8, %v233_v7 }
  0x43   : > { %1301 = vmatpush3.bf16.msra.mxu1 %v1300_v18  ;;  %1325 = vmatpush3.bf16.msra.mxu0 %v1324_v51  ;;  %v1800_v3 = vrot.slane %v1756_v8, %v420_v2 }
  0x44   : > { %1116 = vmatmul.mubr.msk.f32.gmra.mrb[4].mxu0 %vm235_vm1, %v220_v21  ;;  %1140 = vmatmul.mubr.msk.f32.gmra.mrb[4].mxu1 %vm235_vm1, %v228_v22 }
  0x45   : > { %1118 = vmatprep.mubr.msk.f32.mxu0 %vm1584_vm0, %v1585_v1  ;;  %1142 = vmatprep.mubr.msk.f32.mxu1 %vm1584_vm0, %v1585_v1 }
  0x46   : > { %1302 = vmatprep.subr.bf16.mxu1 %v1583_v0  ;;  %1326 = vmatprep.subr.bf16.mxu0 %v1583_v0 }
  0x47   : > { %1304 = vmatpush3.bf16.msra.mxu1 %v1303_v23  ;;  %1328 = vmatpush3.bf16.msra.mxu0 %v1327_v54 }
  0x48   : > { %1119 = vmatmul.mubr.msk.f32.gmra.mrb[6].mxu0 %vm235_vm1, %v221_v26  ;;  %1143 = vmatmul.mubr.msk.f32.gmra.mrb[6].mxu1 %vm235_vm1, %v229_v27 }
  0x49   : > { %1121 = vmatprep.mubr.msk.f32.mxu0 %vm1584_vm0, %v1585_v1  ;;  %1145 = vmatprep.mubr.msk.f32.mxu1 %vm1584_vm0, %v1585_v1 }
  0x4a   : > { %1305 = vmatprep.subr.bf16.mxu1 %v1583_v0  ;;  %1329 = vmatprep.subr.bf16.mxu0 %v1583_v0 }
  0x4b   : > { %1307 = vmatpush3.bf16.msra.mxu1 %v1306_v28  ;;  %1331 = vmatpush3.bf16.msra.mxu0 %v1330_v57 }
  0x4c   : > { %1122 = vmatmul.mubr.msk.f32.gmra.mrb[8].mxu0 %vm235_vm1, %v222_v31  ;;  %1146 = vmatmul.mubr.msk.f32.gmra.mrb[8].mxu1 %vm235_vm1, %v230_v32 }
  0x4d   : > { %1124 = vmatprep.mubr.msk.f32.mxu0 %vm1584_vm0, %v1585_v1  ;;  %1308 = vmatprep.subr.bf16.mxu1 %v1583_v0 }
  0x4e   : > { %1180 = vmatprep.mubr.msk.f32.mxu1 %vm1584_vm0, %v1585_v1  ;;  %1332 = vmatprep.subr.bf16.mxu0 %v1583_v0 }
  0x4f   : > { %1310 = vmatpush3.bf16.msra.mxu1 %v1309_v33  ;;  %1334 = vmatpush3.bf16.msra.mxu0 %v1333_v60 }
  0x50   : > { %1125 = vmatmul.mubr.msk.f32.gmra.mrb[10].mxu0 %vm235_vm1, %v223_v36  ;;  %1311 = vmatprep.subr.bf16.mxu1 %v1583_v0 }
  0x51   : > { %1127 = vmatprep.mubr.msk.f32.mxu0 %vm1584_vm0, %v1585_v1  ;;  %1335 = vmatprep.subr.bf16.mxu0 %v1583_v0 }
  0x53   : > { %1313 = vmatpush3.bf16.msra.mxu1 %v1312_v37  ;;  %1337 = vmatpush3.bf16.msra.mxu0 %v1336_v63  ;;  %v1342_v63 = vpack.c.bf16 %v216_v62, %v215_v61 }
  0x54   : > { %1128 = vmatmul.mubr.msk.f32.gmra.mrb[12].mxu0 %vm235_vm1, %v224_v40  ;;  %1314 = vmatprep.subr.bf16.mxu1 %v1583_v0 }
  0x55   : > { %1130 = vmatprep.mubr.msk.f32.mxu0 %vm1584_vm0, %v1585_v1  ;;  %1338 = vmatprep.subr.bf16.mxu0 %v1583_v0 }
  0x57   : > { %1316 = vmatpush3.bf16.msra.mxu1 %v1315_v41  ;;  %1340 = vmatpush3.bf16.msra.mxu0 %v1339_v4 }
  0x58   : > { %1131 = vmatmul.mubr.msk.f32.gmra.mrb[14].mxu0 %vm235_vm1, %v225_v42  ;;  %1317 = vmatprep.subr.bf16.mxu1 %v1583_v0 }
  0x59   : > { %1251 = vmatprep.mubr.msk.f32.mxu0 %vm1584_vm0, %v1585_v1  ;;  %1341 = vmatprep.subr.bf16.mxu0 %v1583_v0 }
  0x5b   : > { %1319 = vmatpush3.bf16.msra.mxu1 %v1318_v45  ;;  %1343 = vmatpush3.bf16.msra.mxu0 %v1342_v63 }
 0x10f   : > { %v341_v10 = vpop.f32.mrb[0].mxu0  ;;  %v381_v11 = vpop.f32.mrb[0].mxu1 }
 0x110   : > { %v342_v12 = vadd.f32 %v341_v10, %v1759_v9  ;;  %v1111_v13 = vpop.f32.mrb[1].mxu0  ;;  %v1135_v14 = vpop.f32.mrb[1].mxu1  ;;  %v382_v50 = vadd.f32 %v381_v11, %v1759_v9 }
 0x112   : > { %v405_v15 = vmax.f32 %v342_v12, 0.0  ;;  %v413_v52 = vmax.f32 %v382_v50, 0.0 }
 0x113   : > { %v346_v16 = vpop.f32.mrb[2].mxu0  ;;  %v386_v17 = vpop.f32.mrb[2].mxu1 }
 0x114   : > { %v347_v0 = vadd.f32 %v346_v16, %v1759_v9  ;;  %v1114_v18 = vpop.f32.mrb[3].mxu0  ;;  %1181 = vmatmul.mubr.f32.vlgmr.msra.gmra.mrb[10].mxu1 %v405_v15  ;;  %v1138_v19 = vpop.f32.mrb[3].mxu1  ;;  %v387_v53 = vadd.f32 %v386_v17, %v1759_v9 }
 0x115   : > { %1183 = vmatprep.mubr.msk.f32.mxu1 %vm1584_vm0, %v1585_v1 }
 0x116   : > { %v406_v20 = vmax.f32 %v347_v0, 0.0  ;;  %v414_v54 = vmax.f32 %v387_v53, 0.0 }
 0x117   : > { %v351_v21 = vpop.f32.mrb[4].mxu0  ;;  %v391_v22 = vpop.f32.mrb[4].mxu1 }
 0x118   : > { %v352_v23 = vadd.f32 %v351_v21, %v1759_v9  ;;  %v1117_v24 = vpop.f32.mrb[5].mxu0  ;;  %1184 = vmatmul.mubr.f32.gmra.mrb[12].mxu1 %v406_v20  ;;  %v1141_v25 = vpop.f32.mrb[5].mxu1  ;;  %v392_v55 = vadd.f32 %v391_v22, %v1759_v9 }
 0x119   : > { %1186 = vmatprep.mubr.msk.f32.mxu1 %vm1584_vm0, %v1585_v1 }
 0x11a   : > { %v407_v26 = vmax.f32 %v352_v23, 0.0  ;;  %v415_v56 = vmax.f32 %v392_v55, 0.0 }
 0x11b   : > { %v356_v27 = vpop.f32.mrb[6].mxu0  ;;  %v396_v28 = vpop.f32.mrb[6].mxu1 }
 0x11c   : > { %v357_v29 = vadd.f32 %v356_v27, %v1759_v9  ;;  %v1120_v30 = vpop.f32.mrb[7].mxu0  ;;  %1187 = vmatmul.mubr.f32.gmra.mrb[14].mxu1 %v407_v26  ;;  %v1144_v31 = vpop.f32.mrb[7].mxu1  ;;  %v397_v57 = vadd.f32 %v396_v28, %v1759_v9 }
 0x11d   : > { %1189 = vmatprep.mubr.msk.f32.mxu1 %vm1584_vm0, %v1585_v1 }
 0x11e   : > { %v408_v32 = vmax.f32 %v357_v29, 0.0  ;;  %v416_v58 = vmax.f32 %v397_v57, 0.0  ;;  %v567_v57 = vsub.s32 2, %v1753_v6 }
 0x11f   : > { %v361_v33 = vpop.f32.mrb[8].mxu0  ;;  %v401_v34 = vpop.f32.mrb[8].mxu1 }
 0x120   : > { %v362_v35 = vadd.f32 %v361_v33, %v1759_v9  ;;  %v1123_v36 = vpop.f32.mrb[9].mxu0  ;;  %1190 = vmatmul.mubr.f32.gmra.mrb[16].mxu1 %v408_v32  ;;  %v1147_v37 = vpop.f32.mrb[9].mxu1  ;;  %v402_v59 = vadd.f32 %v401_v34, %v1759_v9 }
 0x121   : > { %1192 = vmatprep.mubr.msk.f32.mxu1 %vm1584_vm0, %v1585_v1 }
 0x122   : > { %v409_v38 = vmax.f32 %v362_v35, 0.0  ;;  %v417_v60 = vmax.f32 %v402_v59, 0.0 }
 0x123   : > { %v366_v39 = vpop.f32.mrb[10].mxu0 }
 0x124   : > { %v367_v40 = vadd.f32 %v366_v39, %v1759_v9  ;;  %v1126_v41 = vpop.f32.mrb[11].mxu0  ;;  %1193 = vmatmul.mubr.f32.gmra.mrb[18].mxu1 %v409_v38 }
 0x125   : > { %1195 = vmatprep.mubr.msk.f32.mxu1 %vm1584_vm0, %v1585_v1 }
 0x126   : > { %v410_v42 = vmax.f32 %v367_v40, 0.0 }
 0x127   : > { %v371_v43 = vpop.f32.mrb[12].mxu0 }
 0x128   : > { %v372_v44 = vadd.f32 %v371_v43, %v1759_v9  ;;  %v1129_v45 = vpop.f32.mrb[13].mxu0  ;;  %1196 = vmatmul.mubr.f32.gmra.mrb[20].mxu1 %v410_v42 }
 0x129   : > { %1198 = vmatprep.mubr.msk.f32.mxu1 %vm1584_vm0, %v1585_v1 }
 0x12a   : > { %v411_v46 = vmax.f32 %v372_v44, 0.0 }
 0x12b   : > { %v376_v47 = vpop.f32.mrb[14].mxu0 }
 0x12c   : > { %v377_v48 = vadd.f32 %v376_v47, %v1759_v9  ;;  %v1132_v49 = vpop.f32.mrb[15].mxu0  ;;  %1199 = vmatmul.mubr.f32.gmra.mrb[22].mxu1 %v411_v46 }
 0x12d   : > { %1201 = vmatprep.mubr.msk.f32.mxu1 %vm1584_vm0, %v1585_v1 }
 0x12e   : > { %v412_v51 = vmax.f32 %v377_v48, 0.0 }
 0x130   : > { %1202 = vmatmul.mubr.f32.gmra.mrb[24].mxu1 %v412_v51 }
 0x131   : > { %1204 = vmatprep.mubr.msk.f32.mxu1 %vm1584_vm0, %v1585_v1 }
 0x134   : > { %1205 = vmatmul.mubr.f32.gmra.mrb[26].mxu1 %v413_v52 }
 0x135   : > { %1207 = vmatprep.mubr.msk.f32.mxu1 %vm1584_vm0, %v1585_v1 }
 0x138   : > { %1208 = vmatmul.mubr.f32.gmra.mrb[28].mxu1 %v414_v54 }
 0x139   : > { %1210 = vmatprep.mubr.msk.f32.mxu1 %vm1584_vm0, %v1585_v1 }
 0x13c   : > { %1211 = vmatmul.mubr.f32.gmra.mrb[30].mxu1 %v415_v56 }
 0x13d   : > { %1213 = vmatprep.mubr.msk.f32.mxu1 %vm1584_vm0, %v1585_v1 }
 0x140   : > { %1214 = vmatmul.mubr.f32.gmra.mrb[32].mxu1 %v416_v58  ;;  %v568_v58 = vrot.slane %v1756_v8, %v567_v57 }
 0x141   : > { %1216 = vmatprep.mubr.msk.f32.mxu1 %vm1584_vm0, %v1585_v1 }
 0x144   : > { %1217 = vmatmul.mubr.f32.gmra.mrb[34].mxu1 %v417_v60 }
 0x1e7   : > { %v488_v4 = vpop.f32.mrb[10].mxu1 }
 0x1e8   : > { %v489_v5 = vadd.f32 %v488_v4, %v1800_v3  ;;  %v1182_v7 = vpop.f32.mrb[11].mxu1 }
 0x1ea   : > { %v552_v9 = vmax.f32 %v489_v5, 0.0 }
 0x1eb   : > { %v493_v10 = vpop.f32.mrb[12].mxu1 }
 0x1ec   : > { %v494_v11 = vadd.f32 %v493_v10, %v1800_v3  ;;  %v1185_v12 = vpop.f32.mrb[13].mxu1  ;;  %1252 = vmatmul.mubr.f32.vlgmr.msra.gmra.mrb[16].mxu0 %v552_v9 }
 0x1ed   : > { %1254 = vmatprep.mubr.msk.f32.mxu0 %vm1584_vm0, %v1585_v1 }
 0x1ee   : > { %v553_v13 = vmax.f32 %v494_v11, 0.0 }
 0x1ef   : > { %v498_v14 = vpop.f32.mrb[14].mxu1 }
 0x1f0   : > { %v499_v15 = vadd.f32 %v498_v14, %v1800_v3  ;;  %v1188_v16 = vpop.f32.mrb[15].mxu1  ;;  %1255 = vmatmul.mubr.f32.gmra.mrb[18].mxu0 %v553_v13 }
 0x1f1   : > { %1257 = vmatprep.mubr.msk.f32.mxu0 %vm1584_vm0, %v1585_v1 }
 0x1f2   : > { %v554_v17 = vmax.f32 %v499_v15, 0.0 }
 0x1f3   : > { %v503_v0 = vpop.f32.mrb[16].mxu1 }
 0x1f4   : > { %v504_v18 = vadd.f32 %v503_v0, %v1800_v3  ;;  %v1191_v19 = vpop.f32.mrb[17].mxu1  ;;  %1258 = vmatmul.mubr.f32.gmra.mrb[20].mxu0 %v554_v17 }
 0x1f5   : > { %1260 = vmatprep.mubr.msk.f32.mxu0 %vm1584_vm0, %v1585_v1 }
 0x1f6   : > { %v555_v20 = vmax.f32 %v504_v18, 0.0 }
 0x1f7   : > { %v508_v21 = vpop.f32.mrb[18].mxu1 }
 0x1f8   : > { %v509_v22 = vadd.f32 %v508_v21, %v1800_v3  ;;  %v1194_v23 = vpop.f32.mrb[19].mxu1  ;;  %1261 = vmatmul.mubr.f32.gmra.mrb[22].mxu0 %v555_v20 }
 0x1f9   : > { %1263 = vmatprep.mubr.msk.f32.mxu0 %vm1584_vm0, %v1585_v1 }
 0x1fa   : > { %v556_v24 = vmax.f32 %v509_v22, 0.0 }
 0x1fb   : > { %v513_v25 = vpop.f32.mrb[20].mxu1 }
 0x1fc   : > { %v514_v26 = vadd.f32 %v513_v25, %v1800_v3  ;;  %v1197_v27 = vpop.f32.mrb[21].mxu1  ;;  %1264 = vmatmul.mubr.f32.gmra.mrb[24].mxu0 %v556_v24 }
 0x1fd   : > { %1266 = vmatprep.mubr.msk.f32.mxu0 %vm1584_vm0, %v1585_v1 }
 0x1fe   : > { %v557_v28 = vmax.f32 %v514_v26, 0.0 }
 0x1ff   : > { %v518_v29 = vpop.f32.mrb[22].mxu1 }
 0x200   : > { %v519_v30 = vadd.f32 %v518_v29, %v1800_v3  ;;  %v1200_v31 = vpop.f32.mrb[23].mxu1  ;;  %1267 = vmatmul.mubr.f32.gmra.mrb[26].mxu0 %v557_v28 }
 0x201   : > { %1269 = vmatprep.mubr.msk.f32.mxu0 %vm1584_vm0, %v1585_v1 }
 0x202   : > { %v558_v32 = vmax.f32 %v519_v30, 0.0 }
 0x203   : > { %v523_v33 = vpop.f32.mrb[24].mxu1 }
 0x204   : > { %v524_v34 = vadd.f32 %v523_v33, %v1800_v3  ;;  %v1203_v35 = vpop.f32.mrb[25].mxu1  ;;  %1270 = vmatmul.mubr.f32.gmra.mrb[28].mxu0 %v558_v32 }
 0x205   : > { %1272 = vmatprep.mubr.msk.f32.mxu0 %vm1584_vm0, %v1585_v1 }
 0x206   : > { %v559_v36 = vmax.f32 %v524_v34, 0.0 }
 0x207   : > { %v528_v37 = vpop.f32.mrb[26].mxu1 }
 0x208   : > { %v529_v38 = vadd.f32 %v528_v37, %v1800_v3  ;;  %v1206_v39 = vpop.f32.mrb[27].mxu1  ;;  %1273 = vmatmul.mubr.f32.gmra.mrb[30].mxu0 %v559_v36 }
 0x209   : > { %1275 = vmatprep.mubr.msk.f32.mxu0 %vm1584_vm0, %v1585_v1 }
 0x20a   : > { %v560_v40 = vmax.f32 %v529_v38, 0.0 }
 0x20b   : > { %v533_v41 = vpop.f32.mrb[28].mxu1 }
 0x20c   : > { %v534_v42 = vadd.f32 %v533_v41, %v1800_v3  ;;  %v1209_v43 = vpop.f32.mrb[29].mxu1  ;;  %1276 = vmatmul.mubr.f32.gmra.mrb[32].mxu0 %v560_v40 }
 0x20d   : > { %1278 = vmatprep.mubr.msk.f32.mxu0 %vm1584_vm0, %v1585_v1 }
 0x20e   : > { %v561_v44 = vmax.f32 %v534_v42, 0.0 }
 0x20f   : > { %v538_v45 = vpop.f32.mrb[30].mxu1 }
 0x210   : > { %v539_v46 = vadd.f32 %v538_v45, %v1800_v3  ;;  %v1212_v47 = vpop.f32.mrb[31].mxu1  ;;  %1279 = vmatmul.mubr.f32.gmra.mrb[34].mxu0 %v561_v44 }
 0x211   : > { %1281 = vmatprep.mubr.msk.f32.mxu0 %vm1584_vm0, %v1585_v1 }
 0x212   : > { %v562_v48 = vmax.f32 %v539_v46, 0.0 }
 0x213   : > { %v543_v49 = vpop.f32.mrb[32].mxu1 }
 0x214   : > { %v544_v50 = vadd.f32 %v543_v49, %v1800_v3  ;;  %v1215_v51 = vpop.f32.mrb[33].mxu1  ;;  %1282 = vmatmul.mubr.f32.gmra.mrb[36].mxu0 %v562_v48 }
 0x215   : > { %1284 = vmatprep.mubr.msk.f32.mxu0 %vm1584_vm0, %v1585_v1 }
 0x216   : > { %v563_v52 = vmax.f32 %v544_v50, 0.0 }
 0x217   : > { %v548_v53 = vpop.f32.mrb[34].mxu1 }
 0x218   : > { %v549_v54 = vadd.f32 %v548_v53, %v1800_v3  ;;  %v1218_v55 = vpop.f32.mrb[35].mxu1  ;;  %1285 = vmatmul.mubr.f32.gmra.mrb[38].mxu0 %v563_v52 }
 0x219   : > { %1287 = vmatprep.mubr.msk.f32.mxu0 %vm1584_vm0, %v1585_v1 }
 0x21a   : > { %v564_v56 = vmax.f32 %v549_v54, 0.0 }
 0x21c   : > { %1288 = vmatmul.mubr.f32.gmra.mrb[40].mxu0 %v564_v56 }
 0x2bf   : > { %v635_v59 = vpop.f32.mrb[16].mxu0 }
 0x2c0   : > { %v636_v60 = vadd.f32 %v635_v59, %v568_v58  ;;  %v1253_v61 = vpop.f32.mrb[17].mxu0 }
 0x2c2   : > { %700 = vst.msk [vmem:[%s1842_s20] sm:$0xff] %vm699_vm2, %v636_v60 }
 0x2c3   : > { %v640_v1 = vpop.f32.mrb[18].mxu0 }
 0x2c4   : > { %v641_v62 = vadd.f32 %v640_v1, %v568_v58  ;;  %v1256_v63 = vpop.f32.mrb[19].mxu0 }
 0x2c6   : > { %701 = vst.msk [vmem:[%s1842_s20 + $0x8] sm:$0xff] %vm699_vm2, %v641_v62 }
 0x2c7   : > { %v645_v6 = vpop.f32.mrb[20].mxu0 }
 0x2c8   : > { %v646_v8 = vadd.f32 %v645_v6, %v568_v58  ;;  %v1259_v2 = vpop.f32.mrb[21].mxu0 }
 0x2ca   : > { %702 = vst.msk [vmem:[%s1842_s20 + $0x10] sm:$0xff] %vm699_vm2, %v646_v8 }
 0x2cb   : > { %v650_v3 = vpop.f32.mrb[22].mxu0 }
 0x2cc   : > { %v651_v4 = vadd.f32 %v650_v3, %v568_v58  ;;  %v1262_v5 = vpop.f32.mrb[23].mxu0 }
 0x2ce   : > { %703 = vst.msk [vmem:[%s1842_s20 + $0x18] sm:$0xff] %vm699_vm2, %v651_v4 }
 0x2cf   : > { %v655_v7 = vpop.f32.mrb[24].mxu0 }
 0x2d0   : > { %v656_v9 = vadd.f32 %v655_v7, %v568_v58  ;;  %v1265_v10 = vpop.f32.mrb[25].mxu0 }
 0x2d2   : > { %704 = vst.msk [vmem:[%s1842_s20 + $0x20] sm:$0xff] %vm699_vm2, %v656_v9 }
 0x2d3   : > { %v660_v11 = vpop.f32.mrb[26].mxu0 }
 0x2d4   : > { %v661_v12 = vadd.f32 %v660_v11, %v568_v58  ;;  %v1268_v13 = vpop.f32.mrb[27].mxu0 }
 0x2d6   : > { %705 = vst.msk [vmem:[%s1842_s20 + $0x28] sm:$0xff] %vm699_vm2, %v661_v12 }
 0x2d7   : > { %v665_v14 = vpop.f32.mrb[28].mxu0 }
 0x2d8   : > { %v666_v15 = vadd.f32 %v665_v14, %v568_v58  ;;  %v1271_v16 = vpop.f32.mrb[29].mxu0 }
 0x2da   : > { %706 = vst.msk [vmem:[%s1842_s20 + $0x30] sm:$0xff] %vm699_vm2, %v666_v15 }
 0x2db   : > { %v670_v17 = vpop.f32.mrb[30].mxu0 }
 0x2dc   : > { %v671_v0 = vadd.f32 %v670_v17, %v568_v58  ;;  %v1274_v18 = vpop.f32.mrb[31].mxu0 }
 0x2de   : > { %707 = vst.msk [vmem:[%s1842_s20 + $0x38] sm:$0xff] %vm699_vm2, %v671_v0 }
 0x2df   : > { %v675_v19 = vpop.f32.mrb[32].mxu0 }
 0x2e0   : > { %v676_v20 = vadd.f32 %v675_v19, %v568_v58  ;;  %v1277_v21 = vpop.f32.mrb[33].mxu0 }
 0x2e2   : > { %708 = vst.msk [vmem:[%s1842_s20 + $0x40] sm:$0xff] %vm699_vm2, %v676_v20 }
 0x2e3   : > { %v680_v22 = vpop.f32.mrb[34].mxu0 }
 0x2e4   : > { %v681_v23 = vadd.f32 %v680_v22, %v568_v58  ;;  %v1280_v24 = vpop.f32.mrb[35].mxu0 }
 0x2e6   : > { %709 = vst.msk [vmem:[%s1842_s20 + $0x48] sm:$0xff] %vm699_vm2, %v681_v23 }
 0x2e7   : > { %v685_v25 = vpop.f32.mrb[36].mxu0 }
 0x2e8   : > { %v686_v26 = vadd.f32 %v685_v25, %v568_v58  ;;  %v1283_v27 = vpop.f32.mrb[37].mxu0 }
 0x2ea   : > { %710 = vst.msk [vmem:[%s1842_s20 + $0x50] sm:$0xff] %vm699_vm2, %v686_v26 }
 0x2eb   : > { %v690_v28 = vpop.f32.mrb[38].mxu0 }
 0x2ec   : > { %v691_v29 = vadd.f32 %v690_v28, %v568_v58  ;;  %v1286_v30 = vpop.f32.mrb[39].mxu0  ;;  %719 = sbr.rel (!%p1970_p6) target bundleno = 816 (0x330), region = 36 }
 0x2ee   : > { %711 = vst.msk [vmem:[%s1842_s20 + $0x58] sm:$0xff] %vm699_vm2, %v691_v29 }
 0x2ef   : > { %v695_v31 = vpop.f32.mrb[40].mxu0 }
 0x2f0   : > { %v696_v32 = vadd.f32 %v695_v31, %v568_v58  ;;  %v1289_v33 = vpop.f32.mrb[41].mxu0 }
 0x2f2   : > { %712 = vst.msk [vmem:[%s1842_s20 + $0x60] sm:$0xff] %vm699_vm2, %v696_v32 }
 0x2f3   : > { %s1978_s9 = smov (!%p722_p7, %s721_s9), 13 }
 0x2f4   : > { %s1010_s25 = sshll.u32 %s1978_s9, 7 }
 0x2f5   : > { %p1013_p9 = scmp.eq.s32.totalorder %s1010_s25, 0 }
 0x2f6   : > { %1456 = sdivrem.u32 (!%p1013_p9), %s1978_s9, 13 }
 0x2f7   : > { %730 = sbr.rel (%p1013_p9) target bundleno = 816 (0x330), region = 40 }
 0x2ff   : > { %s1883_s17 = spop.drf %1456 }
 0x300   : > { %p1014_p13 = scmp.le.s32.totalorder %s1883_s17, 0 }
 0x301   : > { %s1971_s12 = smov (!%p1014_p13), %s1877_s24  ;;  %s1972_s26 = smov (!%p1014_p13), %s1842_s20 }
 0x302   : > { %937 = sbr.rel (%p1014_p13) target bundleno = 787 (0x313), region = 117  ;;  %s1892_s27 = smov (!%p1014_p13), 0  }
 0x303   : > { %s1894_s28 = smov (!%p1014_p13), 0  }
 0x309 LB: >> { %v818_v34 = vld [vmem:[%s1554_s26] sm:$0xff]  ;;  %v820_v35 = vld [vmem:[%s1554_s26 + $0x8] sm:$0xff]  ;;  %v822_v36 = vld [vmem:[%s1554_s26 + $0x10] sm:$0xff]  ;;  %s844_s29 = sadd.s32 1, %s1558_s27  ;;  %s812_s28 = sadd.s32 1, %s1562_s28   ;;  %s1562_s28 = sphi %s1894_s28, %s812_s28   ;;  %s1558_s27 = sphi %s1892_s27, %s1973_s27   ;;  %s1554_s26 = sphi %s1972_s26, %s849_s26   ;;  %s1550_s12 = sphi %s1971_s12, %s850_s12  }
 0x30a   : >> { %819 = vst [vmem:[%s1550_s12] sm:$0xff] %v818_v34  ;;  %821 = vst [vmem:[%s1550_s12 + $0x8] sm:$0xff] %v820_v35  ;;  %v824_v37 = vld [vmem:[%s1554_s26 + $0x18] sm:$0xff]  ;;  %v826_v38 = vld [vmem:[%s1554_s26 + $0x20] sm:$0xff]  ;;  %p845_p0 = scmp.ge.s32.totalorder %s844_s29, %s1883_s17  ;;  %p811_p1 = scmp.ge.s32.totalorder %s812_s28, %s1883_s17 }
 0x30b   : >> { %823 = vst [vmem:[%s1550_s12 + $0x10] sm:$0xff] %v822_v36  ;;  %v828_v39 = vld [vmem:[%s1554_s26 + $0x28] sm:$0xff]  ;;  %825 = vst [vmem:[%s1550_s12 + $0x18] sm:$0xff] %v824_v37  ;;  %v830_v40 = vld [vmem:[%s1554_s26 + $0x30] sm:$0xff] }
 0x30c   : >> { %827 = vst [vmem:[%s1550_s12 + $0x20] sm:$0xff] %v826_v38  ;;  %829 = vst [vmem:[%s1550_s12 + $0x28] sm:$0xff] %v828_v39  ;;  %v832_v41 = vld [vmem:[%s1554_s26 + $0x38] sm:$0xff]  ;;  %v834_v42 = vld [vmem:[%s1554_s26 + $0x40] sm:$0xff]  ;;  %s1980_s29 = smov (%p845_p0, %s844_s29), 0  ;;  %814 = sbr.rel (!%p811_p1) target bundleno = 777 (0x309), region = 123 }
 0x30d   : >> { %831 = vst [vmem:[%s1550_s12 + $0x30] sm:$0xff] %v830_v40  ;;  %833 = vst [vmem:[%s1550_s12 + $0x38] sm:$0xff] %v832_v41  ;;  %v836_v43 = vld [vmem:[%s1554_s26 + $0x48] sm:$0xff]  ;;  %v838_v44 = vld [vmem:[%s1554_s26 + $0x50] sm:$0xff]  ;;  %s847_s30 = smul.u32 104, %s1980_s29  ;;  %s1973_s27 = smov %s1980_s29 }
 0x30e   : >> { %835 = vst [vmem:[%s1550_s12 + $0x40] sm:$0xff] %v834_v42  ;;  %v840_v45 = vld [vmem:[%s1554_s26 + $0x58] sm:$0xff]  ;;  %837 = vst [vmem:[%s1550_s12 + $0x48] sm:$0xff] %v836_v43  ;;  %v842_v46 = vld [vmem:[%s1554_s26 + $0x60] sm:$0xff] }
 0x30f   : >> { %839 = vst [vmem:[%s1550_s12 + $0x50] sm:$0xff] %v838_v44  ;;  %841 = vst [vmem:[%s1550_s12 + $0x58] sm:$0xff] %v840_v45  ;;  %s849_s26 = scalar_lea.vmem %s1842_s20, %s847_s30 [#allocation4]  }
 0x310   : >> { %843 = vst [vmem:[%s1550_s12 + $0x60] sm:$0xff] %v842_v46  ;;  %s850_s12 = scalar_lea.vmem %s1877_s24, %s847_s30  }
 0x313 PF: > { %1458 = sdivrem.u32 %s1978_s9, 13 }
 0x314   : > { %s1015_s3 = smul.u32 104, %s1883_s17 }
 0x316   : > { %s855_s4 = scalar_lea.vmem %s1842_s20, %s1015_s3 [#allocation4]   ;;  %s857_s5 = scalar_lea.vmem %s1877_s24, %s1015_s3  }
 0x31c   : > { %s1459_s6 = spop.drf %1458 }
 0x31d   : > { %p1017_p2 = scmp.le.s32.totalorder %s1459_s6, 0 }
 0x31e   : > { %s1564_s7 = smov (!%p1017_p2), %s857_s5   ;;  %s1568_s8 = smov (!%p1017_p2), %s855_s4  }
 0x31f   : > { %951 = sbr.rel (%p1017_p2) target bundleno = 816 (0x330), region = 128  ;;  %s1572_s11 = smov (!%p1017_p2), 0  }
 0x320   : > { %s1576_s14 = smov (!%p1017_p2), 0  }
 0x326 LB: >> { %v867_v47 = vld [vmem:[%s1570_s8] sm:$0xff]  ;;  %s869_s15 = sadd.s32 1, %s1574_s11  ;;  %s861_s14 = sadd.s32 1, %s1578_s14   ;;  %s1578_s14 = sphi %s1576_s14, %s861_s14   ;;  %s1574_s11 = sphi %s1572_s11, %s1573_s11   ;;  %s1570_s8 = sphi %s1568_s8, %s874_s8   ;;  %s1566_s7 = sphi %s1564_s7, %s875_s7  }
 0x327   : >> { %868 = vst [vmem:[%s1566_s7] sm:$0xff] %v867_v47  ;;  %p870_p3 = scmp.ge.s32.totalorder %s869_s15, %s1459_s6  ;;  %p860_p5 = scmp.ge.s32.totalorder %s861_s14, %s1459_s6 }
 0x329   : >> { %s1982_s15 = smov (%p870_p3, %s869_s15), 0  ;;  %863 = sbr.rel (!%p860_p5) target bundleno = 806 (0x326), region = 134 }
 0x32a   : >> { %s1018_s18 = sshll.u32 %s1982_s15, 3  ;;  %s1573_s11 = smov %s1982_s15  }
 0x32b   : >> { %s874_s8 = scalar_lea.vmem %s855_s4, %s1018_s18 [#allocation4]   ;;  %s875_s7 = scalar_lea.vmem %s857_s5, %s1018_s18  }
 0x330 PF: > { %p10_p8 = scmp.ge.s32.totalorder %s1616_s13, 4   ;;  %s1974_s9 = smov %s1542_s10 }
 0x331   : > { %s1975_s10 = smov %s1624_s16  ;;  %s1976_s11 = smov %s1616_s13 }
 0x332   :  { %12 = sbr.rel (!%p10_p8) target bundleno = 2 (0x2), region = 145 }
 0x339   :  { %891 = vsyncpa [#allocation3], 1 }
 0x33a   :  { %893 = vsyncpa [#allocation3 + $0x1], 1 }

</bundles_post_ra>
